<compile_context>
chip_gen: v7x
topology: tpu7x:2x2x1
jax: 0.10.0
libtpu: 0.0.40
codegen_flags: <defaults>
</compile_context>

<pallas_src>
import jax
import jax.numpy as jnp
from jax.experimental import pallas as pl
from jax.experimental.pallas import tpu as pltpu


def _ru(v, m):
    return ((v + m - 1) // m) * m


def _vmem_capacity_bytes():
    try:
        return int(pltpu.get_tpu_info().vmem_capacity_bytes)
    except Exception:
        return 64 * 1024 * 1024  # conservative fallback: v7x physical VMEM


# ----------------------------- Pallas kernel -------------------------------
def _deconv2x2_kernel(x_ref, w_ref, b_ref, o_ref):
    """One (batch, image-row-block) grid step.

    x_ref: (C_in, TP)        native-layout pixels (lanes = h*W + w)
    w_ref: (4*C_out, C_in)   rows ordered (kh, kw, c_out)
    b_ref: (4*C_out, 1)      bias per output row
    o_ref: (4, C_out, TP)    leading dim q = kh*2 + kw
    """
    c_in = x_ref.shape[0]
    c_out = o_ref.shape[1]
    x = x_ref[...]
    w = w_ref[...]
    if c_in <= 8:
        # Tiny contraction: unrolled outer-product FMAs on the VPU over a
        # lane-dense pixel tile (avoids a ~97%-zero-padded MXU pass).
        y = w[:, 0:1] * x[0:1, :]
        for ci in range(1, c_in):
            y = y + w[:, ci:ci + 1] * x[ci:ci + 1, :]
    else:
        y = jnp.dot(w, x, preferred_element_type=jnp.float32)
    y = y + b_ref[...]
    # Rows are ordered (kh, kw, c_out): each quadrant is a contiguous sublane
    # slice, stored straight to its output plane (no in-kernel relayout).
    for q in range(4):
        o_ref[q] = y[q * c_out:(q + 1) * c_out, :].astype(o_ref.dtype)


# ------------------------------- wrapper ------------------------------------
@jax.jit
def upsample_forward(x, weight, bias):
    """Forward of UpSample(in_dim): ConvTranspose2d(in_dim, in_dim, k=2, s=2).

    x:      (N, C_in, H, W)      float32 (PyTorch NCHW layout)
    weight: (C_in, C_out, 2, 2)  float32 (PyTorch ConvTranspose2d layout)
    bias:   (C_out,)             float32
    returns (N, C_out, 2H, 2W)   float32
    """
    N, C_in, H, W = x.shape
    C_out = weight.shape[1]
    R = 4 * C_out
    HW = H * W

    # Free (contiguous) reshape: pixels on lanes, channels on sublanes.
    x3 = x.reshape(N, C_in, HW)
    # Rows ordered (kh, kw, c_out); tiny weight-sized copy, not an activation.
    w2 = weight.transpose(2, 3, 1, 0).reshape(R, C_in)
    b2 = jnp.tile(bias, 4).reshape(R, 1)

    # ---- tile selection: TH image rows per grid step -----------------------
    cap = _vmem_capacity_bytes()
    budget = int(cap * 0.65)
    w_block_bytes = _ru(R, 8) * _ru(C_in, 128) * 4
    single_buffer_w = w_block_bytes >= (4 << 20)   # only worth it for big C
    wbufs = 1 if single_buffer_w else 2

    def vmem_bytes(th):
        tp = th * W
        x_b = 2 * _ru(C_in, 8) * _ru(tp, 128) * 4        # double-buffered in
        o_b = 2 * 4 * _ru(C_out, 8) * _ru(tp, 128) * 4   # double-buffered out
        w_b = wbufs * w_block_bytes
        b_b = wbufs * _ru(R, 8) * 128 * 4
        return x_b + o_b + w_b + b_b

    # Candidates: divisors of H whose pixel tile is lane-aligned, or the full
    # H*W plane (a full-extent block is always legal).
    cands = sorted(d for d in range(1, H + 1)
                   if H % d == 0 and ((d * W) % 128 == 0 or d == H))
    fitting = [d for d in cands if vmem_bytes(d) <= budget] or [cands[0]]
    th = fitting[-1]
    # v7x has 2 TensorCores: keep >= 2 parallel grid steps when possible.
    if N * (H // th) < 2:
        smaller = [d for d in fitting if d <= H // 2]
        if smaller:
            th = smaller[-1]
    tp = th * W
    grid = (N, H // th)

    if single_buffer_w:
        # Constant index_map => double-buffering is pure VMEM waste.
        w_spec = pl.BlockSpec((R, C_in), lambda n, hb: (0, 0),
                              pipeline_mode=pl.Buffered(1))
        b_spec = pl.BlockSpec((R, 1), lambda n, hb: (0, 0),
                              pipeline_mode=pl.Buffered(1))
    else:
        w_spec = pl.BlockSpec((R, C_in), lambda n, hb: (0, 0))
        b_spec = pl.BlockSpec((R, 1), lambda n, hb: (0, 0))

    # TODO(synk): for very large C_in*C_out (resident weight >> VMEM) add a
    # column/K grid axis with "arbitrary" semantics instead of requiring the
    # whole weight to fit on-chip.

    out4 = pl.pallas_call(
        _deconv2x2_kernel,
        out_shape=jax.ShapeDtypeStruct((4, N, C_out, HW), x.dtype),
        grid_spec=pltpu.PrefetchScalarGridSpec(
            num_scalar_prefetch=0,
            grid=grid,
            in_specs=[
                pl.BlockSpec((None, C_in, tp), lambda n, hb: (n, 0, hb)),
                w_spec,
                b_spec,
            ],
            out_specs=pl.BlockSpec((4, None, C_out, tp),
                                   lambda n, hb: (0, n, 0, hb)),
        ),
        compiler_params=pltpu.CompilerParams(
            dimension_semantics=("parallel", "parallel"),
            vmem_limit_bytes=min(int(cap * 0.9), 100 * 1024 * 1024),
        ),
    )(x3, w2, b2)

    # (kh, kw, n, co, h, w) -> (n, co, h, kh, w, kw) -> (N, C_out, 2H, 2W).
    # One fused output-sized XLA transpose is the only remaining extra HBM
    # pass.  TODO(synk): fold the 2x2 interleave into the kernel store once
    # the required 5-D relayout lowers robustly for sub-128 W.
    out = out4.reshape(2, 2, N, C_out, H, W)
    out = out.transpose(2, 3, 4, 0, 5, 1).reshape(N, C_out, 2 * H, 2 * W)
    return out


# ------------------------------- reference ---------------------------------
def _reference(x, weight, bias):
    # y[n, co, 2h+i, 2w+j] = bias[co] + sum_ci x[n, ci, h, w] * W[ci, co, i, j]
    y = jnp.einsum("nchw,cdij->ndhiwj", x, weight)   # (N, C_out, H, 2, W, 2)
    N, C_out, H, _, W, _ = y.shape
    y = y.reshape(N, C_out, 2 * H, 2 * W)
    return y + bias.reshape(1, -1, 1, 1)


if __name__ == "__main__":
    # UpSample(in_dim=4) applied to a (2, 4, 16, 16) input -> (2, 4, 32, 32).
    N, C, H, W = 2, 4, 16, 16
    kh = kw = 2

    key = jax.random.PRNGKey(0)
    kx, kw_key, kb_key = jax.random.split(key, 3)

    x = jax.random.normal(kx, (N, C, H, W), dtype=jnp.float32)
    fan_in = C * kh * kw
    weight = jax.random.normal(kw_key, (C, C, kh, kw), dtype=jnp.float32) / (fan_in ** 0.5)
    bias = 0.1 * jax.random.normal(kb_key, (C,), dtype=jnp.float32)

    out = upsample_forward(x, weight, bias)
    out = jax.block_until_ready(out)

    ref = _reference(x, weight, bias)
    assert out.shape == (N, C, 2 * H, 2 * W)
    assert jnp.allclose(out, ref, atol=1e-4, rtol=1e-4)

    print("KERNEL_OK")
</pallas_src>

<mosaic_0001>
module attributes {stable_mosaic.version = 11 : i64} {
  func.func @_deconv2x2_kernel(%arg0: i32, %arg1: i32, %arg2: memref<1x4x256xf32, #tpu.memory_space<vmem>>, %arg3: memref<16x4xf32, #tpu.memory_space<vmem>>, %arg4: memref<16x1xf32, #tpu.memory_space<vmem>>, %arg5: memref<4x1x4x256xf32, #tpu.memory_space<vmem>>) attributes {dimension_semantics = [#tpu.dimension_semantics<parallel>, #tpu.dimension_semantics<parallel>], iteration_bounds = array<i64: 2, 1>, scalar_prefetch = 0 : i64, scratch_operands = 0 : i64, tpu.core_type = #tpu.core_type<tc>, window_params = [{transform_indices = @transform_0, window_bounds = array<i64: 1, 4, 256>}, {pipeline_mode = #tpu.pipeline_mode<synchronous>, transform_indices = @transform_1, window_bounds = array<i64: 16, 4>}, {pipeline_mode = #tpu.pipeline_mode<synchronous>, transform_indices = @transform_2, window_bounds = array<i64: 16, 1>}, {transform_indices = @transform_3, window_bounds = array<i64: 4, 1, 4, 256>}]} {
    %c0 = arith.constant 0 : index
    %c0_0 = arith.constant 0 : index
    %c0_1 = arith.constant 0 : index
    %0 = vector.load %arg2[%c0, %c0_0, %c0_1] : memref<1x4x256xf32, #tpu.memory_space<vmem>>, vector<1x4x256xf32>
    %1 = vector.shape_cast %0 : vector<1x4x256xf32> to vector<4x256xf32>
    %c0_2 = arith.constant 0 : index
    %c0_3 = arith.constant 0 : index
    %2 = vector.load %arg3[%c0_2, %c0_3] : memref<16x4xf32, #tpu.memory_space<vmem>>, vector<16x4xf32>
    %3 = vector.extract_strided_slice %2 {offsets = [0, 0], sizes = [16, 1], strides = [1, 1]} : vector<16x4xf32> to vector<16x1xf32>
    %4 = vector.extract_strided_slice %1 {offsets = [0, 0], sizes = [1, 256], strides = [1, 1]} : vector<4x256xf32> to vector<1x256xf32>
    %5 = vector.broadcast %3 : vector<16x1xf32> to vector<16x256xf32>
    %6 = vector.broadcast %4 : vector<1x256xf32> to vector<16x256xf32>
    %7 = arith.mulf %5, %6 : vector<16x256xf32>
    %8 = vector.extract_strided_slice %2 {offsets = [0, 1], sizes = [16, 1], strides = [1, 1]} : vector<16x4xf32> to vector<16x1xf32>
    %9 = vector.extract_strided_slice %1 {offsets = [1, 0], sizes = [1, 256], strides = [1, 1]} : vector<4x256xf32> to vector<1x256xf32>
    %10 = vector.broadcast %8 : vector<16x1xf32> to vector<16x256xf32>
    %11 = vector.broadcast %9 : vector<1x256xf32> to vector<16x256xf32>
    %12 = arith.mulf %10, %11 : vector<16x256xf32>
    %13 = arith.addf %7, %12 : vector<16x256xf32>
    %14 = vector.extract_strided_slice %2 {offsets = [0, 2], sizes = [16, 1], strides = [1, 1]} : vector<16x4xf32> to vector<16x1xf32>
    %15 = vector.extract_strided_slice %1 {offsets = [2, 0], sizes = [1, 256], strides = [1, 1]} : vector<4x256xf32> to vector<1x256xf32>
    %16 = vector.broadcast %14 : vector<16x1xf32> to vector<16x256xf32>
    %17 = vector.broadcast %15 : vector<1x256xf32> to vector<16x256xf32>
    %18 = arith.mulf %16, %17 : vector<16x256xf32>
    %19 = arith.addf %13, %18 : vector<16x256xf32>
    %20 = vector.extract_strided_slice %2 {offsets = [0, 3], sizes = [16, 1], strides = [1, 1]} : vector<16x4xf32> to vector<16x1xf32>
    %21 = vector.extract_strided_slice %1 {offsets = [3, 0], sizes = [1, 256], strides = [1, 1]} : vector<4x256xf32> to vector<1x256xf32>
    %22 = vector.broadcast %20 : vector<16x1xf32> to vector<16x256xf32>
    %23 = vector.broadcast %21 : vector<1x256xf32> to vector<16x256xf32>
    %24 = arith.mulf %22, %23 : vector<16x256xf32>
    %25 = arith.addf %19, %24 : vector<16x256xf32>
    %c0_4 = arith.constant 0 : index
    %c0_5 = arith.constant 0 : index
    %26 = vector.load %arg4[%c0_4, %c0_5] : memref<16x1xf32, #tpu.memory_space<vmem>>, vector<16x1xf32>
    %27 = vector.broadcast %26 : vector<16x1xf32> to vector<16x256xf32>
    %28 = arith.addf %25, %27 : vector<16x256xf32>
    %29 = vector.extract_strided_slice %28 {offsets = [0, 0], sizes = [4, 256], strides = [1, 1]} : vector<16x256xf32> to vector<4x256xf32>
    %c0_6 = arith.constant 0 : index
    %c0_7 = arith.constant 0 : index
    %c0_8 = arith.constant 0 : index
    %c0_9 = arith.constant 0 : index
    %30 = vector.load %arg5[%c0_6, %c0_7, %c0_8, %c0_9] : memref<4x1x4x256xf32, #tpu.memory_space<vmem>>, vector<1x1x4x256xf32>
    %31 = vector.shape_cast %30 : vector<1x1x4x256xf32> to vector<4x256xf32>
    %32 = vector.shape_cast %29 : vector<4x256xf32> to vector<1x1x4x256xf32>
    tpu.vector_store %arg5[%c0_6, %c0_7, %c0_8, %c0_9], %32 {strides = array<i32>} : memref<4x1x4x256xf32, #tpu.memory_space<vmem>>, vector<1x1x4x256xf32>,
    %33 = vector.extract_strided_slice %28 {offsets = [4, 0], sizes = [4, 256], strides = [1, 1]} : vector<16x256xf32> to vector<4x256xf32>
    %c1 = arith.constant 1 : index
    %c0_10 = arith.constant 0 : index
    %c0_11 = arith.constant 0 : index
    %c0_12 = arith.constant 0 : index
    %34 = vector.load %arg5[%c1, %c0_10, %c0_11, %c0_12] : memref<4x1x4x256xf32, #tpu.memory_space<vmem>>, vector<1x1x4x256xf32>
    %35 = vector.shape_cast %34 : vector<1x1x4x256xf32> to vector<4x256xf32>
    %36 = vector.shape_cast %33 : vector<4x256xf32> to vector<1x1x4x256xf32>
    tpu.vector_store %arg5[%c1, %c0_10, %c0_11, %c0_12], %36 {strides = array<i32>} : memref<4x1x4x256xf32, #tpu.memory_space<vmem>>, vector<1x1x4x256xf32>,
    %37 = vector.extract_strided_slice %28 {offsets = [8, 0], sizes = [4, 256], strides = [1, 1]} : vector<16x256xf32> to vector<4x256xf32>
    %c2 = arith.constant 2 : index
    %c0_13 = arith.constant 0 : index
    %c0_14 = arith.constant 0 : index
    %c0_15 = arith.constant 0 : index
    %38 = vector.load %arg5[%c2, %c0_13, %c0_14, %c0_15] : memref<4x1x4x256xf32, #tpu.memory_space<vmem>>, vector<1x1x4x256xf32>
    %39 = vector.shape_cast %38 : vector<1x1x4x256xf32> to vector<4x256xf32>
    %40 = vector.shape_cast %37 : vector<4x256xf32> to vector<1x1x4x256xf32>
    tpu.vector_store %arg5[%c2, %c0_13, %c0_14, %c0_15], %40 {strides = array<i32>} : memref<4x1x4x256xf32, #tpu.memory_space<vmem>>, vector<1x1x4x256xf32>,
    %41 = vector.extract_strided_slice %28 {offsets = [12, 0], sizes = [4, 256], strides = [1, 1]} : vector<16x256xf32> to vector<4x256xf32>
    %c3 = arith.constant 3 : index
    %c0_16 = arith.constant 0 : index
    %c0_17 = arith.constant 0 : index
    %c0_18 = arith.constant 0 : index
    %42 = vector.load %arg5[%c3, %c0_16, %c0_17, %c0_18] : memref<4x1x4x256xf32, #tpu.memory_space<vmem>>, vector<1x1x4x256xf32>
    %43 = vector.shape_cast %42 : vector<1x1x4x256xf32> to vector<4x256xf32>
    %44 = vector.shape_cast %41 : vector<4x256xf32> to vector<1x1x4x256xf32>
    tpu.vector_store %arg5[%c3, %c0_16, %c0_17, %c0_18], %44 {strides = array<i32>} : memref<4x1x4x256xf32, #tpu.memory_space<vmem>>, vector<1x1x4x256xf32>,
    return
  }
  func.func @transform_0(%arg0: i32, %arg1: i32) -> (i32, i32, i32) {
    %c0_i32 = arith.constant 0 : i32
    %c0_i32_0 = arith.constant 0 : i32
    return %arg0, %c0_i32, %arg1 : i32, i32, i32
  }
  func.func @transform_1(%arg0: i32, %arg1: i32) -> (i32, i32) {
    %c0_i32 = arith.constant 0 : i32
    %c0_i32_0 = arith.constant 0 : i32
    %c0_i32_1 = arith.constant 0 : i32
    return %c0_i32, %c0_i32_0 : i32, i32
  }
  func.func @transform_2(%arg0: i32, %arg1: i32) -> (i32, i32) {
    %c0_i32 = arith.constant 0 : i32
    %c0_i32_0 = arith.constant 0 : i32
    %c0_i32_1 = arith.constant 0 : i32
    return %c0_i32, %c0_i32_0 : i32, i32
  }
  func.func @transform_3(%arg0: i32, %arg1: i32) -> (i32, i32, i32, i32) {
    %c0_i32 = arith.constant 0 : i32
    %c0_i32_0 = arith.constant 0 : i32
    %c0_i32_1 = arith.constant 0 : i32
    return %c0_i32, %arg0, %c0_i32_0, %arg1 : i32, i32, i32, i32
  }
}

</mosaic_0001>

<bundles_post_ra>
// kernel: tile.0
= control target key start
LH: loop header
LB: loop body
LE: loop exit
PB: predicated region body
PF: predicated region fallthrough
CT: control target
= control target key end

     0   :  { %s34_s8 = smov 125   ;;  %vm7_vm0 = vcmask 7168   ;;  %s35_s11 = smov 126   ;;  %s61_s0 = inlined_call_operand.vmem [shape: f32[4,4], index: 0, kind: input, shape index: {}]   ;;  %s62_s1 = inlined_call_operand.vmem [shape: f32[16,1], index: 1, kind: output, shape index: {}]  }
   0x1   :  { %v4_v0 = vld [vmem:[%s61_s0] sm:$0xf]  ;;  %s33_s0 = smov 127  }
   0x2   :  { %5 = vst [vmem:[#allocation0] sm:$0xf] %v4_v0 }
   0x9   :  { %v9_v1 = vld [vmem:[#allocation0] sm:$0xf]  }
   0xa   :  { %v21_v2 = vld [vmem:[#allocation0] sm:$0xf]   ;;  %10 = vrot.lane.b32.xlu0 %v9_v1, %s33_s0 }
   0xb   :  { %22 = vrot.lane.b32.xlu1 %v21_v2, %s34_s8  ;;  %v6_v3 = vld [vmem:[#allocation0] sm:$0xf]  }
   0xc   :  { %v15_v4 = vld [vmem:[#allocation0] sm:$0xf]   ;;  %8 = vst.msk [vmem:[%s62_s1] ss:$4 sm:$0xf] %vm7_vm0, %v6_v3  }
   0xe   :  { %16 = vrot.lane.b32.xlu0 %v15_v4, %s35_s11 }
  0x7c   :  { %v11_v5 = vpop.permute.xlu0 %10  }
  0x7d   :  { %v23_v6 = vpop.permute.xlu1 %22   ;;  %27 = vst.msk [vmem:[%s62_s1 + $0x1] ss:$4 sm:$0xf] %vm7_vm0, %v11_v5  }
  0x7e   :  { %29 = vst.msk [vmem:[%s62_s1 + $0x3] ss:$4 sm:$0xf] %vm7_vm0, %v23_v6  }
  0x80   :  { %v17_v7 = vpop.permute.xlu0 %16  }
  0x81   :  { %28 = vst.msk [vmem:[%s62_s1 + $0x2] ss:$4 sm:$0xf] %vm7_vm0, %v17_v7  }

// kernel: tile.8
= control target key start
LH: loop header
LB: loop body
LE: loop exit
PB: predicated region body
PF: predicated region fallthrough
CT: control target
= control target key end

     0   :  { %s22_s0 = inlined_call_operand.vmem [shape: f32[4], index: 0, kind: input, shape index: {}]   ;;  %s23_s1 = inlined_call_operand.vmem [shape: f32[4,4], index: 1, kind: output, shape index: {}]  }
   0x1   :  { %v4_v0 = vld [vmem:[%s22_s0] ss:$0 sm:$0xff] }
   0x2   :  { %5 = vst [vmem:[%s23_s1] sm:$0xf] %v4_v0 }

// kernel: upsample_forward.1
= control target key start
LH: loop header
LB: loop body
LE: loop exit
PB: predicated region body
PF: predicated region fallthrough
CT: control target
= control target key end

     0   :  { %s627_s12 = smov 0   ;;  %s629_s13 = smov 0   ;;  %s709_s0 = inlined_call_operand.vmem [shape: f32[2,4,256], index: 0, kind: input, shape index: {}]   ;;  %s710_s1 = inlined_call_operand.vmem [shape: f32[16,4], index: 1, kind: input, shape index: {}]   ;;  %s711_s2 = inlined_call_operand.vmem [shape: f32[16,1], index: 2, kind: input, shape index: {}]   ;;  %s712_s3 = inlined_call_operand.vmem [shape: f32[4,2,4,256], index: 3, kind: output, shape index: {}]  }
   0x1   :  { %s631_s14 = smov 0   ;;  %s633_s15 = smov 0  }
   0x2   :  { %s635_s16 = smov 0  }
   0x3 LB: > { %s493_s17 = sadd.s32 4294967295, %s601_s16   ;;  %s25_s18 = sadd.s32 1, %s597_s15  ;;  %s601_s16 = sphi %s635_s16, %s13_s16   ;;  %s597_s15 = sphi %s633_s15, %s717_s15   ;;  %s593_s14 = sphi %s631_s14, %s716_s14   ;;  %s589_s13 = sphi %s629_s13, %s715_s13   ;;  %s585_s12 = sphi %s627_s12, %s714_s12  }
   0x4   : > { %p27_p0 = scmp.ge.s32.totalorder %s25_s18, 2  ;;  %s104_s19 = sadd.s32 1, %s589_s13 }
   0x5   : > { %p114_p1 = scmp.ne.s32.totalorder %s589_s13, %s585_s12  ;;  %p115_p2 = scmp.eq.s32.totalorder %s493_s17, 1 }
   0x6   : > { %s719_s18 = smov (%p27_p0, %s25_s18), 0  ;;  %p497_p4 = scmp.ge.s32.totalorder %s601_s16, 1 }
   0x7   : > { %p659_p3 = por %p115_p2, %p114_p1  ;;  %s99_s21 = ssub.s32 %s597_s15, %s719_s18 }
   0x8   : > { %p158_p5 = scmp.lt.s32.totalorder %s601_s16, 3  ;;  %p102_p6 = scmp.eq.s32.totalorder %s99_s21, 0 }
   0xa   : > { %p159_p7 = pnand %p497_p4, %p158_p5 }
   0xb   : > { %s668_s22 = scalar_select %p102_p6, %s589_s13, %s104_s19  }
   0xc   : > { %162 = sbr.rel (%p159_p7) target bundleno = 178 (0xb2), region = 32  ;;  %v197_v0 = vld [vmem:[%s710_s1] sm:$0xff] (!%p159_p7)  ;;  %v603_v1 = vmov (!%p159_p7), 1   ;;  %v604_v2 = vmov (!%p159_p7), 0   ;;  %v198_v3 = vld [vmem:[%s710_s1 + $0x8] sm:$0xff] (!%p159_p7)  ;;  %v605_v4 = vmov (!%p159_p7), 2   ;;  %v210_v8 = vlaneseq (!%p159_p7) }
   0xd   : > { %556 = vset.pattern.permute.xlu1 (!%p159_p7), %v603_v1  ;;  %555 = vset.pattern.permute.xlu0 (!%p159_p7), %v604_v2  ;;  %v606_v5 = vmov (!%p159_p7), 3   ;;  %v334_v6 = vld [vmem:[%s711_s2] sm:$0xff] (!%p159_p7)  ;;  %v335_v7 = vld [vmem:[%s711_s2 + $0x8] sm:$0xff] (!%p159_p7)  ;;  %p186_p8 = scmp.lt.s32.totalorder (!%p159_p7), %s593_s14, 1  ;;  %s182_s9 = sand.u32 (!%p159_p7), 1, %s585_s12  }
   0xe   : > { %233 = vperm.xlu1 (!%p159_p7), %556, %v197_v0   ;;  %201 = vperm.xlu0 (!%p159_p7), %555, %v197_v0   ;;  %v211_v9 = vshrl.u32 (!%p159_p7), %v210_v8, 7  ;;  %s498_s10 = sshll.u32 (!%p159_p7), %s182_s9, 5 }
   0xf   : > { %s184_s11 = scalar_lea.vmem (!%p159_p7), [#allocation2], %s498_s10 }
  0x10   : > { %v242_v10 = vsub.s32 (!%p159_p7), 1, %v211_v9  ;;  %v246_v11 = vsub.s32 (!%p159_p7), 5, %v211_v9  ;;  %v212_v12 = vsub.s32 (!%p159_p7), 0, %v211_v9  ;;  %v216_v13 = vsub.s32 (!%p159_p7), 4, %v211_v9 }
  0x11   : > { %v276_v15 = vsub.s32 (!%p159_p7), 2, %v211_v9  ;;  %v280_v16 = vsub.s32 (!%p159_p7), 6, %v211_v9  ;;  %v310_v25 = vsub.s32 (!%p159_p7), 3, %v211_v9  ;;  %v314_v26 = vsub.s32 (!%p159_p7), 7, %v211_v9 }
  0x12   : > { %237 = vperm.xlu1 (!%p159_p7), %556, %v198_v3   ;;  %206 = vperm.xlu0 (!%p159_p7), %555, %v198_v3  }
  0x13   : > { %s187_s4 = scalar_select %p186_p8, %s593_s14, 1 }
  0x14   : > { %s510_s12 = sshll.u32 (%p659_p3), %s593_s14, 3 }
  0x15   : > { %s509_s5 = sshll.u32 %s187_s4, 3  ;;  %s380_s21 = scalar_lea.vmem (%p659_p3), %s712_s3, %s510_s12 }
  0x16   : > { %558 = vset.pattern.permute.xlu1 %v605_v4  ;;  %557 = vset.pattern.permute.xlu0 %v605_v4  ;;  %s193_s8 = scalar_lea.vmem %s709_s0, %s509_s5 }
  0x17   : > { %271 = vperm.xlu1 %558, %v198_v3   ;;  %267 = vperm.xlu0 %557, %v197_v0   ;;  %v196_v14 = vld [vmem:[%s193_s8] sm:$0xff] }
  0x18   : > { %v243_v19 = vrot.slane %v196_v14, %v242_v10  ;;  %v247_v20 = vrot.slane %v196_v14, %v246_v11  ;;  %v213_v21 = vrot.slane %v196_v14, %v212_v12  ;;  %v217_v22 = vrot.slane %v196_v14, %v216_v13 }
  0x19   : > { %v277_v23 = vrot.slane %v196_v14, %v276_v15  ;;  %v281_v24 = vrot.slane %v196_v14, %v280_v16  ;;  %v311_v35 = vrot.slane %v196_v14, %v310_v25  ;;  %v315_v36 = vrot.slane %v196_v14, %v314_v26 }
  0x1a   : > { %v253_v29 = vrot.slane %v243_v19, %v242_v10  ;;  %v257_v30 = vrot.slane %v247_v20, %v242_v10  ;;  %v223_v31 = vrot.slane %v213_v21, %v212_v12  ;;  %v227_v32 = vrot.slane %v217_v22, %v212_v12 }
  0x1b   : > { %559 = vset.pattern.permute.xlu1 %v606_v5  ;;  %560 = vset.pattern.permute.xlu0 %v606_v5  ;;  %v287_v33 = vrot.slane %v277_v23, %v276_v15  ;;  %v291_v34 = vrot.slane %v281_v24, %v276_v15  ;;  %v321_v45 = vrot.slane %v311_v35, %v310_v25 }
  0x1c   : > { %301 = vperm.xlu1 %559, %v197_v0   ;;  %305 = vperm.xlu0 %560, %v198_v3   ;;  %v325_v46 = vrot.slane %v315_v36, %v310_v25 }
  0x20   : > { %561 = vset.pattern.permute.xlu1 %v604_v2  ;;  %562 = vset.pattern.permute.xlu0 %v604_v2 }
  0x21   : > { %338 = vperm.xlu1 %561, %v334_v6  }
  0x25   : > { %343 = vperm.xlu1 %561, %v335_v7  }
  0x8d   : > { %v234_v17 = vpop.permute.xlu1 %233  ;;  %v202_v18 = vpop.permute.xlu0 %201 }
  0x8e   : > { %v258_v37 = vmul.f32 %v253_v29, %v234_v17  ;;  %v259_v38 = vmul.f32 %v257_v30, %v234_v17  ;;  %v228_v39 = vmul.f32 %v223_v31, %v202_v18  ;;  %v229_v40 = vmul.f32 %v227_v32, %v202_v18 }
  0x90   : > { %v262_v47 = vadd.f32 %v258_v37, %v228_v39  ;;  %v263_v48 = vadd.f32 %v259_v38, %v229_v40 }
  0x91   : > { %v238_v27 = vpop.permute.xlu1 %237  ;;  %v207_v28 = vpop.permute.xlu0 %206 }
  0x92   : > { %v260_v49 = vmul.f32 %v253_v29, %v238_v27  ;;  %v261_v50 = vmul.f32 %v257_v30, %v238_v27  ;;  %v230_v51 = vmul.f32 %v223_v31, %v207_v28  ;;  %v231_v52 = vmul.f32 %v227_v32, %v207_v28 }
  0x94   : > { %v264_v63 = vadd.f32 %v260_v49, %v230_v51  ;;  %v265_v0 = vadd.f32 %v261_v50, %v231_v52 }
  0x96   : > { %v272_v41 = vpop.permute.xlu1 %271  ;;  %v268_v42 = vpop.permute.xlu0 %267 }
  0x97   : > { %v292_v43 = vmul.f32 %v287_v33, %v268_v42  ;;  %v293_v44 = vmul.f32 %v291_v34, %v268_v42  ;;  %v294_v59 = vmul.f32 %v287_v33, %v272_v41  ;;  %v295_v60 = vmul.f32 %v291_v34, %v272_v41 }
  0x99   : > { %v296_v54 = vadd.f32 %v292_v43, %v262_v47  ;;  %v297_v55 = vadd.f32 %v293_v44, %v263_v48  ;;  %v298_v4 = vadd.f32 %v294_v59, %v264_v63  ;;  %v299_v5 = vadd.f32 %v295_v60, %v265_v0 }
  0x9b   : > { %v302_v53 = vpop.permute.xlu1 %301  ;;  %v306_v58 = vpop.permute.xlu0 %305 }
  0x9c   : > { %v326_v56 = vmul.f32 %v321_v45, %v302_v53  ;;  %v327_v57 = vmul.f32 %v325_v46, %v302_v53  ;;  %v328_v1 = vmul.f32 %v321_v45, %v306_v58  ;;  %v329_v2 = vmul.f32 %v325_v46, %v306_v58 }
  0x9e   : > { %v330_v61 = vadd.f32 %v326_v56, %v296_v54  ;;  %v331_v62 = vadd.f32 %v327_v57, %v297_v55  ;;  %v332_v10 = vadd.f32 %v328_v1, %v298_v4  ;;  %v333_v11 = vadd.f32 %v329_v2, %v299_v5 }
  0xa0   : > { %v339_v3 = vpop.permute.xlu1 %338 }
  0xa1   : > { %v346_v6 = vadd.f32 %v339_v3, %v330_v61  ;;  %v347_v7 = vadd.f32 %v339_v3, %v331_v62 }
  0xa3   : > { %v352_v8 = vcombine.low %v346_v6, %v347_v7  ;;  %v355_v9 = vcombine.high %v346_v6, %v347_v7  ;;  %375 = sbr.rel (!%p659_p3) target bundleno = 178 (0xb2), region = 36 }
  0xa4   : > { %v344_v12 = vpop.permute.xlu1 %343 }
  0xa5   : > { %354 = vst [vmem:[%s184_s11] sm:$0xff] %v352_v8  ;;  %501 = vst [vmem:[%s184_s11 + $0x8] sm:$0xff] %v355_v9  ;;  %v348_v13 = vadd.f32 %v344_v12, %v332_v10  ;;  %v349_v14 = vadd.f32 %v344_v12, %v333_v11 }
  0xa7   : > { %v361_v15 = vcombine.low %v348_v13, %v349_v14  ;;  %v365_v16 = vcombine.high %v348_v13, %v349_v14 }
  0xa9   : > { %502 = vst [vmem:[%s184_s11 + $0x10] sm:$0xff] %v361_v15  ;;  %503 = vst [vmem:[%s184_s11 + $0x18] sm:$0xff] %v365_v16 }
  0xac   : > { %v414_v17 = vld [vmem:[%s184_s11] sm:$0xff]  ;;  %v416_v18 = vld [vmem:[%s184_s11 + $0x8] sm:$0xff] }
  0xad   : > { %415 = vst [vmem:[%s380_s21] sm:$0xff] %v414_v17  ;;  %417 = vst [vmem:[%s380_s21 + $0x10] sm:$0xff] %v416_v18 }
  0xb0   : > { %v418_v19 = vld [vmem:[%s184_s11 + $0x10] sm:$0xff]  ;;  %v420_v20 = vld [vmem:[%s184_s11 + $0x18] sm:$0xff] }
  0xb1   : > { %419 = vst [vmem:[%s380_s21 + $0x20] sm:$0xff] %v418_v19  ;;  %421 = vst [vmem:[%s380_s21 + $0x30] sm:$0xff] %v420_v20 }
  0xb2 PF: > { %s13_s16 = sadd.s32 1, %s601_s16   ;;  %s714_s12 = smov %s589_s13 }
  0xb3   : > { %p10_p9 = scmp.ge.s32.totalorder %s13_s16, 4   ;;  %s715_s13 = smov %s668_s22 }
  0xb4   : > { %s716_s14 = smov %s597_s15  ;;  %s717_s15 = smov %s719_s18 }
  0xb5   :  { %12 = sbr.rel (!%p10_p9) target bundleno = 3 (0x3), region = 103 }

</bundles_post_ra>
